<compile_context>
chip_gen: v5e
topology: v5e:2x2
jax: 0.10.0
libtpu: 0.0.40
codegen_flags: <defaults>
</compile_context>

<pallas_src>
import functools

import jax
import jax.numpy as jnp
from jax.experimental import pallas as pl
from jax.experimental.pallas import tpu as pltpu

LANE = 128       # feature / hidden / class dims are lane-padded to this
ROW_MULT = 16    # row padding multiple (bf16 sublane tile)
MIB = 1024 * 1024


def _pick_chunk_rows(n_pad):
    """Row-chunk size for streaming (A+I) HBM->VMEM underneath layer-1 compute."""
    for rows in (512, 256, 128, 64):
        if n_pad % rows == 0 and n_pad // rows >= 2:
            return rows
    return n_pad   # small graphs: single DMA, nothing worth overlapping


def _vmem_limit_bytes():
    # Per-generation budget: leave ~16 MiB headroom below physical VMEM, cap at
    # 100 MiB on 128 MiB parts (v5e/v6e); yields ~48 MiB on 64 MiB v7x.
    try:
        cap = int(getattr(pltpu.get_tpu_info(), "vmem_capacity_bytes", 128 * MIB))
    except Exception:
        cap = 64 * MIB
    return int(max(32 * MIB, min(cap - 16 * MIB, 100 * MIB)))


def gcn_kernel(adj_hbm, d_ref, x_ref, w1_ref, b1_ref, w2_ref, b2_ref,
               w3_ref, b3_ref, out_ref, a_vmem, copy_sems, *,
               n_valid, chunk_rows):
    n_pad = a_vmem.shape[0]
    lane = x_ref.shape[1]
    n_chunks = n_pad // chunk_rows

    # ---- stream (A + I) HBM -> VMEM: issue every row-chunk DMA up front so the
    # ---- DMA engine runs ahead of the chunked layer-1 MXU work below.
    copies = []
    for c in range(n_chunks):
        rows = pl.ds(c * chunk_rows, chunk_rows)
        cp = pltpu.make_async_copy(adj_hbm.at[rows, :], a_vmem.at[rows, :],
                                   copy_sems.at[c])
        cp.start()
        copies.append(cp)

    # deg^{-1/2} broadcast hoisted once; reused by all 6 aggregations (12 scalings).
    d_b = jnp.broadcast_to(d_ref[...], (n_pad, lane))            # [N,128] f32

    # ---- layer 1:  h = relu((A_hat @ x) @ W1 + b1), computed per row chunk of A
    # ---- while later chunks are still in flight.
    w1 = w1_ref[...]
    b1 = b1_ref[...]
    dx = (x_ref[...] * d_b).astype(jnp.bfloat16)                 # d * X, shared
    h_parts = []
    for c in range(n_chunks):
        copies[c].wait()
        a_c = a_vmem[pl.ds(c * chunk_rows, chunk_rows), :]
        d_c = d_b[c * chunk_rows:(c + 1) * chunk_rows]
        agg = jnp.dot(a_c, dx, preferred_element_type=jnp.float32) * d_c
        h_c = jnp.dot(agg.astype(jnp.bfloat16), w1,
                      preferred_element_type=jnp.float32) + b1
        h_parts.append(jnp.maximum(h_c, 0.0))
    h = h_parts[0] if n_chunks == 1 else jnp.concatenate(h_parts, axis=0)

    # (A + I) is now fully resident in VMEM for the remaining 5 aggregations.
    a = a_vmem[...]

    def aggregate(m):
        # A_hat @ M == d * (A @ (d * M)): normalization on cheap [N,128] VPU tiles.
        scaled = (m * d_b).astype(jnp.bfloat16)
        return jnp.dot(a, scaled, preferred_element_type=jnp.float32) * d_b

    # ---- layer 2 applied 4x with shared weights (weight load + bias broadcast hoisted)
    w2 = w2_ref[...]
    b2 = jnp.broadcast_to(b2_ref[...], (n_pad, lane))
    for _ in range(4):
        hw = jnp.dot(h.astype(jnp.bfloat16), w2,
                     preferred_element_type=jnp.float32)
        h = jnp.maximum(aggregate(hw) + b2, 0.0)

    # ---- layer 3 ----
    hw3 = jnp.dot(h.astype(jnp.bfloat16), w3_ref[...],
                  preferred_element_type=jnp.float32)
    logits = aggregate(hw3) + b3_ref[...]                        # [N, C_pad] f32

    # ---- softmax over dim=0 (node axis); padded rows masked out exactly. ----
    row_ids = jax.lax.broadcasted_iota(jnp.int32, logits.shape, 0)
    valid = row_ids < n_valid
    logits = jnp.where(valid, logits, -jnp.inf)
    m = jnp.max(logits, axis=0, keepdims=True)
    e = jnp.where(valid, jnp.exp(logits - m), 0.0)
    out_ref[...] = e / jnp.sum(e, axis=0, keepdims=True)


def _pad2d(x, row_mult, col_mult):
    pr = (-x.shape[0]) % row_mult
    pc = (-x.shape[1]) % col_mult
    if pr == 0 and pc == 0:
        return x
    return jnp.pad(x, ((0, pr), (0, pc)))


def build_graph_operands(edge_index, num_nodes, n_pad):
    """(A + I) built directly in bf16 + deg^{-1/2} from an O(E) scatter.

    Message j -> i fills row i (target), col j (source). Padded rows/cols are zero.
    """
    src = edge_index[0]
    dst = edge_index[1]
    diag = jnp.arange(num_nodes)
    adj = jnp.zeros((n_pad, n_pad), dtype=jnp.bfloat16)
    adj = adj.at[dst, src].add(1.0)
    adj = adj.at[diag, diag].add(1.0)                   # self loops
    deg = jnp.zeros((n_pad,), dtype=jnp.float32).at[dst].add(1.0)
    deg = deg.at[diag].add(1.0)
    d_inv_sqrt = jnp.where(deg > 0, jax.lax.rsqrt(deg), 0.0)[:, None]
    return adj, d_inv_sqrt


def gcn_forward(node_features, edge_index, params):
    n, _ = node_features.shape
    c = params["w3"].shape[1]
    n_pad = n + ((-n) % ROW_MULT)

    adj, d_inv_sqrt = build_graph_operands(edge_index, n, n_pad)

    # Lane-pad feature / hidden / class dims to 128 (padded columns stay exactly
    # zero through every layer and are sliced off after the call).
    x_p = _pad2d(node_features.astype(jnp.float32), ROW_MULT, LANE)
    w1_p = _pad2d(params["w1"], LANE, LANE)
    w2_p = _pad2d(params["w2"], LANE, LANE)
    w3_p = _pad2d(params["w3"], LANE, LANE)
    b1_p = _pad2d(params["b1"], 1, LANE)
    b2_p = _pad2d(params["b2"], 1, LANE)
    b3_p = _pad2d(params["b3"], 1, LANE)
    c_pad = w3_p.shape[1]

    args = (
        adj,                              # [N,N]   bf16  (HBM; streamed manually)
        d_inv_sqrt,                       # [N,1]   f32
        x_p.astype(jnp.bfloat16),         # [N,128] bf16
        w1_p.astype(jnp.bfloat16), b1_p,
        w2_p.astype(jnp.bfloat16), b2_p,
        w3_p.astype(jnp.bfloat16), b3_p,
    )

    def full_spec(shape):
        return pl.BlockSpec(shape, lambda: (0,) * len(shape))

    in_specs = [pl.BlockSpec(memory_space=pl.ANY)]          # adjacency stays in HBM
    in_specs += [full_spec(a.shape) for a in args[1:]]

    chunk_rows = _pick_chunk_rows(n_pad)
    n_chunks = n_pad // chunk_rows

    # Advisory cost: 6 aggregations over [N,N]x[N,128] + 6 [N,128]x[128,128] matmuls.
    flops = 6 * 2 * n_pad * n_pad * LANE + 6 * 2 * n_pad * LANE * LANE
    bytes_accessed = (2 * n_pad * n_pad + 2 * n_pad * LANE + 3 * 2 * LANE * LANE
                      + 3 * 4 * LANE + 4 * n_pad + 4 * n_pad * c_pad)
    cost = pl.CostEstimate(flops=flops, transcendentals=n_pad * c_pad,
                           bytes_accessed=bytes_accessed)

    out_padded = pl.pallas_call(
        functools.partial(gcn_kernel, n_valid=n, chunk_rows=chunk_rows),
        out_shape=jax.ShapeDtypeStruct((n_pad, c_pad), jnp.float32),
        in_specs=in_specs,
        out_specs=full_spec((n_pad, c_pad)),
        scratch_shapes=[
            pltpu.VMEM((n_pad, n_pad), jnp.bfloat16),   # single resident copy of A
            pltpu.SemaphoreType.DMA((n_chunks,)),
        ],
        compiler_params=pltpu.CompilerParams(vmem_limit_bytes=_vmem_limit_bytes()),
        cost_estimate=cost,
    )(*args)

    return out_padded[:n, :c]


def gcn_reference(node_features, edge_index, params):
    """Pure-JAX f32 reference of the PyTorch module's forward pass."""
    n = node_features.shape[0]
    src, dst = edge_index[0], edge_index[1]
    adj = jnp.zeros((n, n), dtype=jnp.float32).at[dst, src].add(1.0)
    adj = adj + jnp.eye(n, dtype=jnp.float32)
    deg = jnp.sum(adj, axis=1)
    d = jnp.where(deg > 0, 1.0 / jnp.sqrt(deg), 0.0)
    a_hat = d[:, None] * adj * d[None, :]

    def conv(h, w, b):
        return a_hat @ (h @ w) + b

    h = jnp.maximum(conv(node_features.astype(jnp.float32),
                         params["w1"], params["b1"]), 0.0)
    for _ in range(4):
        h = jnp.maximum(conv(h, params["w2"], params["b2"]), 0.0)
    logits = conv(h, params["w3"], params["b3"])
    return jax.nn.softmax(logits, axis=0)


def init_params(key, input_size, hidden_size, num_classes):
    """Deterministic parameter init (GCNConv-style: weight [in, out] + bias [out])."""
    ks = jax.random.split(key, 6)

    def layer(kw, kb, fan_in, fan_out):
        scale = 1.0 / jnp.sqrt(jnp.float32(fan_in))
        w = jax.random.uniform(kw, (fan_in, fan_out), jnp.float32, -scale, scale)
        b = jax.random.uniform(kb, (1, fan_out), jnp.float32, -scale, scale)
        return w, b

    w1, b1 = layer(ks[0], ks[1], input_size, hidden_size)
    w2, b2 = layer(ks[2], ks[3], hidden_size, hidden_size)
    w3, b3 = layer(ks[4], ks[5], hidden_size, num_classes)
    return {"w1": w1, "b1": b1, "w2": w2, "b2": b2, "w3": w3, "b3": b3}


if __name__ == "__main__":
    key = jax.random.PRNGKey(0)
    k_feat, k_edge, k_param = jax.random.split(key, 3)

    num_nodes = 16
    input_size = 8
    hidden_size = 32
    num_classes = 4
    num_edges = 40

    node_features = jax.random.normal(
        k_feat, (num_nodes, input_size), dtype=jnp.float32)
    edge_index = jax.random.randint(
        k_edge, (2, num_edges), 0, num_nodes, dtype=jnp.int32)

    params = init_params(k_param, input_size, hidden_size, num_classes)

    out = gcn_forward(node_features, edge_index, params)
    out = jax.block_until_ready(out)

    assert out.shape == (num_nodes, num_classes)
    # columns of a dim=0 softmax each sum to 1 (exact divide in-kernel)
    assert jnp.allclose(jnp.sum(out, axis=0), jnp.ones(num_classes), atol=1e-4)

    # loose comparison vs f32 reference (kernel feeds the MXU in bf16)
    ref = gcn_reference(node_features, edge_index, params)
    max_err = float(jnp.max(jnp.abs(out - ref)))
    assert max_err < 5e-2, f"max abs err vs reference too large: {max_err}"

    print("KERNEL_OK")
</pallas_src>

<mosaic_0001>
module attributes {stable_mosaic.version = 11 : i64} {
  func.func @gcn_kernel(%arg0: memref<16x16xbf16, #tpu.memory_space<any>>, %arg1: memref<16x1xf32, #tpu.memory_space<vmem>>, %arg2: memref<16x128xbf16, #tpu.memory_space<vmem>>, %arg3: memref<128x128xbf16, #tpu.memory_space<vmem>>, %arg4: memref<1x128xf32, #tpu.memory_space<vmem>>, %arg5: memref<128x128xbf16, #tpu.memory_space<vmem>>, %arg6: memref<1x128xf32, #tpu.memory_space<vmem>>, %arg7: memref<128x128xbf16, #tpu.memory_space<vmem>>, %arg8: memref<1x128xf32, #tpu.memory_space<vmem>>, %arg9: memref<16x128xf32, #tpu.memory_space<vmem>>, %arg10: memref<16x16xbf16, #tpu.memory_space<vmem>>, %arg11: memref<1x!tpu.dma_semaphore, #tpu.memory_space<semaphore_mem>>) attributes {dimension_semantics = [], scalar_prefetch = 0 : i64, scratch_operands = 2 : i64, tpu.core_type = #tpu.core_type<tc>} {
    %c0_i32 = arith.constant 0 : i32
    %c0_i32_0 = arith.constant 0 : i32
    %c0_i32_1 = arith.constant 0 : i32
    %0 = tpu.memref_slice %arg0[%c0_i32_0, %c0_i32_1] : memref<16x16xbf16, #tpu.memory_space<any>> -> memref<16x16xbf16, #tpu.memory_space<any>>
    %c0_i32_2 = arith.constant 0 : i32
    %c0_i32_3 = arith.constant 0 : i32
    %1 = tpu.memref_slice %arg10[%c0_i32_2, %c0_i32_3] : memref<16x16xbf16, #tpu.memory_space<vmem>> -> memref<16x16xbf16, #tpu.memory_space<vmem>>
    %2 = tpu.memref_slice %arg11[%c0_i32] : memref<1x!tpu.dma_semaphore, #tpu.memory_space<semaphore_mem>> -> memref<1x!tpu.dma_semaphore, #tpu.memory_space<semaphore_mem>>
    %3 = tpu.memref_squeeze %2 : memref<1x!tpu.dma_semaphore, #tpu.memory_space<semaphore_mem>> -> memref<!tpu.dma_semaphore, #tpu.memory_space<semaphore_mem>>
    tpu.enqueue_dma source(%0 : memref<16x16xbf16, #tpu.memory_space<any>>) target(%1 : memref<16x16xbf16, #tpu.memory_space<vmem>>) target_semaphore(%3 : memref<!tpu.dma_semaphore, #tpu.memory_space<semaphore_mem>>)
    %c0 = arith.constant 0 : index
    %c0_4 = arith.constant 0 : index
    %4 = vector.load %arg1[%c0, %c0_4] : memref<16x1xf32, #tpu.memory_space<vmem>>, vector<16x1xf32>
    %5 = vector.shape_cast %4 : vector<16x1xf32> to vector<16x1xf32>
    %6 = vector.broadcast %5 : vector<16x1xf32> to vector<16x128xf32>
    %c0_5 = arith.constant 0 : index
    %c0_6 = arith.constant 0 : index
    %7 = vector.load %arg3[%c0_5, %c0_6] : memref<128x128xbf16, #tpu.memory_space<vmem>>, vector<128x128xbf16>
    %c0_7 = arith.constant 0 : index
    %c0_8 = arith.constant 0 : index
    %8 = vector.load %arg4[%c0_7, %c0_8] : memref<1x128xf32, #tpu.memory_space<vmem>>, vector<1x128xf32>
    %c0_9 = arith.constant 0 : index
    %c0_10 = arith.constant 0 : index
    %9 = vector.load %arg2[%c0_9, %c0_10] : memref<16x128xbf16, #tpu.memory_space<vmem>>, vector<16x128xbf16>
    %10 = arith.extf %9 : vector<16x128xbf16> to vector<16x128xf32>
    %11 = arith.mulf %10, %6 : vector<16x128xf32>
    %12 = arith.truncf %11 : vector<16x128xf32> to vector<16x128xbf16>
    %c0_i32_11 = arith.constant 0 : i32
    %c0_i32_12 = arith.constant 0 : i32
    %c0_i32_13 = arith.constant 0 : i32
    %13 = tpu.memref_slice %arg0[%c0_i32_12, %c0_i32_13] : memref<16x16xbf16, #tpu.memory_space<any>> -> memref<16x16xbf16, #tpu.memory_space<any>>
    %c0_i32_14 = arith.constant 0 : i32
    %c0_i32_15 = arith.constant 0 : i32
    %14 = tpu.memref_slice %arg10[%c0_i32_14, %c0_i32_15] : memref<16x16xbf16, #tpu.memory_space<vmem>> -> memref<16x16xbf16, #tpu.memory_space<vmem>>
    %15 = tpu.memref_slice %arg11[%c0_i32_11] : memref<1x!tpu.dma_semaphore, #tpu.memory_space<semaphore_mem>> -> memref<1x!tpu.dma_semaphore, #tpu.memory_space<semaphore_mem>>
    %16 = tpu.memref_squeeze %15 : memref<1x!tpu.dma_semaphore, #tpu.memory_space<semaphore_mem>> -> memref<!tpu.dma_semaphore, #tpu.memory_space<semaphore_mem>>
    tpu.wait_dma2 semaphore(%16 : memref<!tpu.dma_semaphore, #tpu.memory_space<semaphore_mem>>) src(%13 : memref<16x16xbf16, #tpu.memory_space<any>>) dst(%14 : memref<16x16xbf16, #tpu.memory_space<vmem>>)
    %c0_16 = arith.constant 0 : index
    %c0_17 = arith.constant 0 : index
    %17 = vector.load %arg10[%c0_16, %c0_17] : memref<16x16xbf16, #tpu.memory_space<vmem>>, vector<16x16xbf16>
    %cst = arith.constant dense<0.000000e+00> : vector<16x128xf32>
    %18 = tpu.matmul %17, %12, %cst {dimension_numbers = #tpu.dot_dimension_numbers<[1], [0], [0], [1], [0, 0, 1, 1], [], []>} : vector<16x16xbf16>, vector<16x128xbf16>, vector<16x128xf32> -> vector<16x128xf32>
    %19 = arith.mulf %18, %6 : vector<16x128xf32>
    %20 = arith.truncf %19 : vector<16x128xf32> to vector<16x128xbf16>
    %cst_18 = arith.constant dense<0.000000e+00> : vector<16x128xf32>
    %21 = tpu.matmul %20, %7, %cst_18 {dimension_numbers = #tpu.dot_dimension_numbers<[1], [0], [0], [1], [0, 0, 1, 1], [], []>} : vector<16x128xbf16>, vector<128x128xbf16>, vector<16x128xf32> -> vector<16x128xf32>
    %22 = vector.broadcast %8 : vector<1x128xf32> to vector<16x128xf32>
    %23 = arith.addf %21, %22 : vector<16x128xf32>
    %cst_19 = arith.constant 0.000000e+00 : f32
    %24 = vector.broadcast %cst_19 : f32 to vector<16x128xf32>
    %25 = arith.maximumf %23, %24 : vector<16x128xf32>
    %c0_20 = arith.constant 0 : index
    %c0_21 = arith.constant 0 : index
    %26 = vector.load %arg10[%c0_20, %c0_21] : memref<16x16xbf16, #tpu.memory_space<vmem>>, vector<16x16xbf16>
    %c0_22 = arith.constant 0 : index
    %c0_23 = arith.constant 0 : index
    %27 = vector.load %arg5[%c0_22, %c0_23] : memref<128x128xbf16, #tpu.memory_space<vmem>>, vector<128x128xbf16>
    %c0_24 = arith.constant 0 : index
    %c0_25 = arith.constant 0 : index
    %28 = vector.load %arg6[%c0_24, %c0_25] : memref<1x128xf32, #tpu.memory_space<vmem>>, vector<1x128xf32>
    %29 = vector.shape_cast %28 : vector<1x128xf32> to vector<1x128xf32>
    %30 = vector.broadcast %29 : vector<1x128xf32> to vector<16x128xf32>
    %31 = arith.truncf %25 : vector<16x128xf32> to vector<16x128xbf16>
    %cst_26 = arith.constant dense<0.000000e+00> : vector<16x128xf32>
    %32 = tpu.matmul %31, %27, %cst_26 {dimension_numbers = #tpu.dot_dimension_numbers<[1], [0], [0], [1], [0, 0, 1, 1], [], []>} : vector<16x128xbf16>, vector<128x128xbf16>, vector<16x128xf32> -> vector<16x128xf32>
    %33 = arith.mulf %32, %6 : vector<16x128xf32>
    %34 = arith.truncf %33 : vector<16x128xf32> to vector<16x128xbf16>
    %cst_27 = arith.constant dense<0.000000e+00> : vector<16x128xf32>
    %35 = tpu.matmul %26, %34, %cst_27 {dimension_numbers = #tpu.dot_dimension_numbers<[1], [0], [0], [1], [0, 0, 1, 1], [], []>} : vector<16x16xbf16>, vector<16x128xbf16>, vector<16x128xf32> -> vector<16x128xf32>
    %36 = arith.mulf %35, %6 : vector<16x128xf32>
    %37 = arith.addf %36, %30 : vector<16x128xf32>
    %cst_28 = arith.constant 0.000000e+00 : f32
    %38 = vector.broadcast %cst_28 : f32 to vector<16x128xf32>
    %39 = arith.maximumf %37, %38 : vector<16x128xf32>
    %40 = arith.truncf %39 : vector<16x128xf32> to vector<16x128xbf16>
    %cst_29 = arith.constant dense<0.000000e+00> : vector<16x128xf32>
    %41 = tpu.matmul %40, %27, %cst_29 {dimension_numbers = #tpu.dot_dimension_numbers<[1], [0], [0], [1], [0, 0, 1, 1], [], []>} : vector<16x128xbf16>, vector<128x128xbf16>, vector<16x128xf32> -> vector<16x128xf32>
    %42 = arith.mulf %41, %6 : vector<16x128xf32>
    %43 = arith.truncf %42 : vector<16x128xf32> to vector<16x128xbf16>
    %cst_30 = arith.constant dense<0.000000e+00> : vector<16x128xf32>
    %44 = tpu.matmul %26, %43, %cst_30 {dimension_numbers = #tpu.dot_dimension_numbers<[1], [0], [0], [1], [0, 0, 1, 1], [], []>} : vector<16x16xbf16>, vector<16x128xbf16>, vector<16x128xf32> -> vector<16x128xf32>
    %45 = arith.mulf %44, %6 : vector<16x128xf32>
    %46 = arith.addf %45, %30 : vector<16x128xf32>
    %cst_31 = arith.constant 0.000000e+00 : f32
    %47 = vector.broadcast %cst_31 : f32 to vector<16x128xf32>
    %48 = arith.maximumf %46, %47 : vector<16x128xf32>
    %49 = arith.truncf %48 : vector<16x128xf32> to vector<16x128xbf16>
    %cst_32 = arith.constant dense<0.000000e+00> : vector<16x128xf32>
    %50 = tpu.matmul %49, %27, %cst_32 {dimension_numbers = #tpu.dot_dimension_numbers<[1], [0], [0], [1], [0, 0, 1, 1], [], []>} : vector<16x128xbf16>, vector<128x128xbf16>, vector<16x128xf32> -> vector<16x128xf32>
    %51 = arith.mulf %50, %6 : vector<16x128xf32>
    %52 = arith.truncf %51 : vector<16x128xf32> to vector<16x128xbf16>
    %cst_33 = arith.constant dense<0.000000e+00> : vector<16x128xf32>
    %53 = tpu.matmul %26, %52, %cst_33 {dimension_numbers = #tpu.dot_dimension_numbers<[1], [0], [0], [1], [0, 0, 1, 1], [], []>} : vector<16x16xbf16>, vector<16x128xbf16>, vector<16x128xf32> -> vector<16x128xf32>
    %54 = arith.mulf %53, %6 : vector<16x128xf32>
    %55 = arith.addf %54, %30 : vector<16x128xf32>
    %cst_34 = arith.constant 0.000000e+00 : f32
    %56 = vector.broadcast %cst_34 : f32 to vector<16x128xf32>
    %57 = arith.maximumf %55, %56 : vector<16x128xf32>
    %58 = arith.truncf %57 : vector<16x128xf32> to vector<16x128xbf16>
    %cst_35 = arith.constant dense<0.000000e+00> : vector<16x128xf32>
    %59 = tpu.matmul %58, %27, %cst_35 {dimension_numbers = #tpu.dot_dimension_numbers<[1], [0], [0], [1], [0, 0, 1, 1], [], []>} : vector<16x128xbf16>, vector<128x128xbf16>, vector<16x128xf32> -> vector<16x128xf32>
    %60 = arith.mulf %59, %6 : vector<16x128xf32>
    %61 = arith.truncf %60 : vector<16x128xf32> to vector<16x128xbf16>
    %cst_36 = arith.constant dense<0.000000e+00> : vector<16x128xf32>
    %62 = tpu.matmul %26, %61, %cst_36 {dimension_numbers = #tpu.dot_dimension_numbers<[1], [0], [0], [1], [0, 0, 1, 1], [], []>} : vector<16x16xbf16>, vector<16x128xbf16>, vector<16x128xf32> -> vector<16x128xf32>
    %63 = arith.mulf %62, %6 : vector<16x128xf32>
    %64 = arith.addf %63, %30 : vector<16x128xf32>
    %cst_37 = arith.constant 0.000000e+00 : f32
    %65 = vector.broadcast %cst_37 : f32 to vector<16x128xf32>
    %66 = arith.maximumf %64, %65 : vector<16x128xf32>
    %67 = arith.truncf %66 : vector<16x128xf32> to vector<16x128xbf16>
    %c0_38 = arith.constant 0 : index
    %c0_39 = arith.constant 0 : index
    %68 = vector.load %arg7[%c0_38, %c0_39] : memref<128x128xbf16, #tpu.memory_space<vmem>>, vector<128x128xbf16>
    %cst_40 = arith.constant dense<0.000000e+00> : vector<16x128xf32>
    %69 = tpu.matmul %67, %68, %cst_40 {dimension_numbers = #tpu.dot_dimension_numbers<[1], [0], [0], [1], [0, 0, 1, 1], [], []>} : vector<16x128xbf16>, vector<128x128xbf16>, vector<16x128xf32> -> vector<16x128xf32>
    %70 = arith.mulf %69, %6 : vector<16x128xf32>
    %71 = arith.truncf %70 : vector<16x128xf32> to vector<16x128xbf16>
    %cst_41 = arith.constant dense<0.000000e+00> : vector<16x128xf32>
    %72 = tpu.matmul %26, %71, %cst_41 {dimension_numbers = #tpu.dot_dimension_numbers<[1], [0], [0], [1], [0, 0, 1, 1], [], []>} : vector<16x16xbf16>, vector<16x128xbf16>, vector<16x128xf32> -> vector<16x128xf32>
    %73 = arith.mulf %72, %6 : vector<16x128xf32>
    %c0_42 = arith.constant 0 : index
    %c0_43 = arith.constant 0 : index
    %74 = vector.load %arg8[%c0_42, %c0_43] : memref<1x128xf32, #tpu.memory_space<vmem>>, vector<1x128xf32>
    %75 = vector.broadcast %74 : vector<1x128xf32> to vector<16x128xf32>
    %76 = arith.addf %73, %75 : vector<16x128xf32>
    %77 = tpu.iota {dimensions = array<i32: 0>} : vector<16x128xi32>
    %c16_i32 = arith.constant 16 : i32
    %78 = vector.broadcast %c16_i32 : i32 to vector<16x128xi32>
    %79 = arith.cmpi slt, %77, %78 : vector<16x128xi32>
    %cst_44 = arith.constant 0xFF800000 : f32
    %80 = vector.broadcast %cst_44 : f32 to vector<16x128xf32>
    %81 = arith.select %79, %76, %80 : vector<16x128xi1>, vector<16x128xf32>
    %cst_45 = arith.constant dense<0xFF800000> : vector<128xf32>
    %82 = vector.multi_reduction <maximumf>, %81, %cst_45 [0] : vector<16x128xf32> to vector<128xf32>
    %83 = vector.shape_cast %82 : vector<128xf32> to vector<1x128xf32>
    %84 = vector.broadcast %83 : vector<1x128xf32> to vector<16x128xf32>
    %85 = arith.subf %81, %84 : vector<16x128xf32>
    %86 = math.exp %85 : vector<16x128xf32>
    %cst_46 = arith.constant 0.000000e+00 : f32
    %87 = vector.broadcast %cst_46 : f32 to vector<16x128xf32>
    %88 = arith.select %79, %86, %87 : vector<16x128xi1>, vector<16x128xf32>
    %cst_47 = arith.constant dense<0.000000e+00> : vector<128xf32>
    %89 = vector.multi_reduction <add>, %88, %cst_47 [0] : vector<16x128xf32> to vector<128xf32>
    %90 = vector.shape_cast %89 : vector<128xf32> to vector<1x128xf32>
    %91 = vector.broadcast %90 : vector<1x128xf32> to vector<16x128xf32>
    %92 = arith.divf %88, %91 : vector<16x128xf32>
    %c0_48 = arith.constant 0 : index
    %c0_49 = arith.constant 0 : index
    %93 = vector.load %arg9[%c0_48, %c0_49] : memref<16x128xf32, #tpu.memory_space<vmem>>, vector<16x128xf32>
    tpu.vector_store %arg9[%c0_48, %c0_49], %92 {strides = array<i32>} : memref<16x128xf32, #tpu.memory_space<vmem>>, vector<16x128xf32>,
    return
  }
}

</mosaic_0001>

<bundles_post_ra>
// kernel: tpu_custom_call.1
= control target key start
LH: loop header
LB: loop body
LE: loop exit
PB: predicated region body
PF: predicated region fallthrough
CT: control target
= control target key end

     0   :  { %14 = vsyncpa [#allocation5], 0  ;;  %s1078_s0 = inlined_call_operand.vmem [shape: bf16[16,16], index: 0, kind: input, shape index: {}]   ;;  %s1079_s1 = inlined_call_operand.vmem [shape: f32[16,1], index: 1, kind: input, shape index: {}]   ;;  %s1080_s2 = inlined_call_operand.vmem [shape: bf16[16,128], index: 2, kind: input, shape index: {}]   ;;  %s1081_s3 = inlined_call_operand.hbm [shape: bf16[128,128], index: 3, kind: input, shape index: {}]   ;;  %s1082_s4 = inlined_call_operand.vmem [shape: f32[1,128], index: 4, kind: input, shape index: {}]   ;;  %s1083_s5 = inlined_call_operand.hbm [shape: bf16[128,128], index: 5, kind: input, shape index: {}]   ;;  %s1084_s6 = inlined_call_operand.vmem [shape: f32[1,128], index: 6, kind: input, shape index: {}]   ;;  %s1085_s7 = inlined_call_operand.hbm [shape: bf16[128,128], index: 7, kind: input, shape index: {}]   ;;  %s1086_s8 = inlined_call_operand.vmem [shape: f32[1,128], index: 8, kind: input, shape index: {}]   ;;  %s1087_s9 = inlined_call_operand.hbm [shape: f32[16,128], index: 9, kind: output, shape index: {}]  }
   0x1   :  { %15 = vsyncpa [#allocation8], 0 }
   0x2   :  { %16 = vsyncpa [#allocation6], 0  ;;  %s40_s11 = sshll.u32 %s1083_s5, 4  ;;  %s907_s12 = smov [#allocation7]   ;;  %s41_s11 = int_to_ptr.hbm [resolvable:$true] %s40_s11 }
   0x3   :  { %s42_s13 = sshll.u32 %s907_s12, 4  ;;  %s25_s16 = sshll.u32 %s1081_s3, 4  ;;  %s43_s13 = int_to_ptr.vmem [resolvable:$true] %s42_s13  ;;  %s26_s16 = int_to_ptr.hbm [resolvable:$true] %s25_s16 }
   0x4   :  { %s908_s17 = smov 64   ;;  %s909_s18 = smov 4  }
   0x5   :  { %48 = dma.hbm_to_vmem [thread:$0]  %s41_s11, 1024, %s43_s13, [#allocation8], %s908_s17, %s908_s17, %s909_s18  }
   0x6   :  { %s910_s19 = smov [#allocation4]   ;;  %s55_s23 = sshll.u32 %s1085_s7, 4  ;;  %s56_s23 = int_to_ptr.hbm [resolvable:$true] %s55_s23 }
   0x7   :  { %s27_s20 = sshll.u32 %s910_s19, 4  ;;  %s911_s5 = smov [#allocation9]   ;;  %s28_s20 = int_to_ptr.vmem [resolvable:$true] %s27_s20 }
   0x8   :  { %33 = dma.hbm_to_vmem [thread:$0]  %s26_s16, 1024, %s28_s20, [#allocation5], %s908_s17, %s908_s17, %s909_s18  }
   0x9   :  { %s57_s24 = sshll.u32 %s911_s5, 4  ;;  %s58_s24 = int_to_ptr.vmem [resolvable:$true] %s57_s24 }
   0xa   :  { %63 = dma.hbm_to_vmem [thread:$0]  %s56_s23, 1024, %s58_s24, [#allocation8], %s908_s17, %s908_s17, %s909_s18  }
   0xb   :  { %899 = dma.done.wait [#allocation5], 1024  }
   0xc   :  { %900 = vsyncadd [#allocation5], 4294966272 }
   0xd   :  { %901 = dma.done.wait [#allocation8], 2048  }
   0xe   :  { %902 = vsyncadd [#allocation8], 4294965248  ;;  %v105_v0 = vld [vmem:[%s1078_s0] sm:$0xff]  ;;  %v912_v2 = vmov 0  }
   0xf   :  { %106 = vst [vmem:[#allocation2] sm:$0xff] %v105_v0  ;;  %v113_v1 = vld [vmem:[%s1079_s1] sm:$0xff]  ;;  %794 = vset.pattern.permute.xlu0 %v912_v2 }
  0x10   :  { %112 = vsyncadd [#allocation3], 128  ;;  %117 = vperm.xlu0 %794, %v113_v1   ;;  %v114_v3 = vld [vmem:[%s1079_s1 + $0x8] sm:$0xff]  ;;  %v660_v6 = vld [vmem:[#allocation4 + $0x8] sm:$0xf] }
  0x11   :  { %v656_v4 = vld [vmem:[#allocation4] sm:$0xf]  ;;  %v756_v5 = vld [vmem:[#allocation4] sm:$0xf0]  ;;  %v757_v7 = vld [vmem:[#allocation4 + $0x8] sm:$0xf0] }
  0x12   :  { %v664_v8 = vld [vmem:[#allocation4 + $0x10] sm:$0xf]  ;;  %v758_v9 = vld [vmem:[#allocation4 + $0x10] sm:$0xf0]  ;;  %v668_v10 = vld [vmem:[#allocation4 + $0x18] sm:$0xf] }
  0x13   :  { %v759_v11 = vld [vmem:[#allocation4 + $0x18] sm:$0xf0]  ;;  %v672_v12 = vld [vmem:[#allocation4 + $0x20] sm:$0xf]  ;;  %v760_v13 = vld [vmem:[#allocation4 + $0x20] sm:$0xf0] }
  0x14   :  { %v676_v14 = vld [vmem:[#allocation4 + $0x28] sm:$0xf]  ;;  %v761_v15 = vld [vmem:[#allocation4 + $0x28] sm:$0xf0]  ;;  %v680_v16 = vld [vmem:[#allocation4 + $0x30] sm:$0xf] }
  0x15   :  { %v762_v17 = vld [vmem:[#allocation4 + $0x30] sm:$0xf0]  ;;  %v684_v18 = vld [vmem:[#allocation4 + $0x38] sm:$0xf]  ;;  %v763_v19 = vld [vmem:[#allocation4 + $0x38] sm:$0xf0] }
  0x16   :  { %v987_v20 = vld [vmem:[%s1082_s4] sm:$0x1] }
  0x17   :  { %v782_v22 = vld [vmem:[%s1080_s2] sm:$0xff]  }
  0x18   :  { %122 = vperm.xlu0 %794, %v114_v3   ;;  %v783_v23 = vunpack.c.l.bf16 %v782_v22  ;;  %v784_v24 = vunpack.c.h.bf16 %v782_v22 }
  0x82   :  { %v989_v21 = vpop.permute.xlu0 %117 }
  0x83   :  { %v146_v26 = vmul.f32 %v783_v23, %v989_v21 }
  0x8a   :  { %v994_v25 = vpop.permute.xlu0 %122 }
  0x8b   :  { %v147_v27 = vmul.f32 %v784_v24, %v994_v25 }
  0x8d   :  { %v148_v28 = vpack.c.bf16 %v147_v27, %v146_v26 }
  0x8e   :  { %903 = dma.done.wait [#allocation3], 128 }
  0x8f   :  { %904 = vsyncadd [#allocation3], 4294967168  ;;  %171 = vmatpush.bf16.msra.mxu0 %v148_v28  ;;  %v685_v29 = vor.u32 %v763_v19, %v684_v18  ;;  %v681_v30 = vor.u32 %v762_v17, %v680_v16  ;;  %vm160_vm0 = vcmask 130048   ;;  %v677_v31 = vor.u32 %v761_v15, %v676_v14  ;;  %v998_v32 = vld [vmem:[#allocation2] sm:$0xff]  ;;  %v1005_v39 = vld [vmem:[#allocation7 + $0x30] sm:$0xff]  ;;  %s625_s14 = sshll.u32 %s1087_s9, 4  ;;  %s626_s14 = int_to_ptr.hbm [resolvable:$true] %s625_s14 }
  0x90   :  { %v673_v33 = vor.u32 %v760_v13, %v672_v12  ;;  %v669_v34 = vor.u32 %v759_v11, %v668_v10  ;;  %v665_v35 = vor.u32 %v758_v9, %v664_v8  ;;  %v661_v36 = vor.u32 %v757_v7, %v660_v6  ;;  %v1002_v38 = vld [vmem:[#allocation7 + $0x38] sm:$0xff]  ;;  %v1009_v40 = vld [vmem:[#allocation7 + $0x28] sm:$0xff]  ;;  %v1013_v41 = vld [vmem:[#allocation7 + $0x20] sm:$0xff]  ;;  %s914_s15 = smov 128   ;;  %s915_s16 = smov 8  }
  0x91   :  { %232 = vmatpush.bf16.msra.mxu1 %v685_v29  ;;  %v657_v37 = vor.u32 %v756_v5, %v656_v4  ;;  %317 = vmatpush.bf16.msra.mxu2 %v1002_v38  ;;  %v768_v47 = vld [vmem:[#allocation7 + $0x18] sm:$0xff]  ;;  %v767_v48 = vld [vmem:[#allocation7 + $0x10] sm:$0xff]  ;;  %v766_v49 = vld [vmem:[#allocation7 + $0x8] sm:$0xff]  ;;  %v182_v52 = vperm.slane %v987_v20, 0 }
  0x92   :  { %653 = vmatmul.msk.bf16.vlgmr.msra.gmra.mxu0 %vm160_vm0, %v998_v32  ;;  %v765_v50 = vld [vmem:[#allocation7] sm:$0xff]  ;;  %v1032_v1 = vld [vmem:[%s1084_s6] ss:$0 sm:$0xff] }
  0x93   :  { %355 = vmatpush.bf16.msrb.mxu0 %v1002_v38 }
  0x95   :  { %233 = vmatpush.bf16.msra.mxu1 %v681_v30  ;;  %318 = vmatpush.bf16.msra.mxu2 %v1005_v39 }
  0x97   :  { %356 = vmatpush.bf16.msrb.mxu0 %v1005_v39 }
  0x99   :  { %234 = vmatpush.bf16.msra.mxu1 %v677_v31  ;;  %319 = vmatpush.bf16.msra.mxu2 %v1009_v40 }
  0x9b   :  { %357 = vmatpush.bf16.msrb.mxu0 %v1009_v40 }
  0x9d   :  { %235 = vmatpush.bf16.msra.mxu1 %v673_v33  ;;  %320 = vmatpush.bf16.msra.mxu2 %v1013_v41 }
  0x9f   :  { %358 = vmatpush.bf16.msrb.mxu0 %v1013_v41 }
  0xa1   :  { %236 = vmatpush.bf16.msra.mxu1 %v669_v34  ;;  %321 = vmatpush.bf16.msra.mxu2 %v768_v47 }
  0xa3   :  { %359 = vmatpush.bf16.msrb.mxu0 %v768_v47 }
  0xa5   :  { %237 = vmatpush.bf16.msra.mxu1 %v665_v35  ;;  %322 = vmatpush.bf16.msra.mxu2 %v767_v48 }
  0xa7   :  { %360 = vmatpush.bf16.msrb.mxu0 %v767_v48 }
  0xa9   :  { %238 = vmatpush.bf16.msra.mxu1 %v661_v36  ;;  %323 = vmatpush.bf16.msra.mxu2 %v766_v49 }
  0xab   :  { %361 = vmatpush.bf16.msrb.mxu0 %v766_v49 }
  0xad   :  { %239 = vmatpush.bf16.msra.mxu1 %v657_v37  ;;  %324 = vmatpush.bf16.msra.mxu2 %v765_v50 }
  0xaf   :  { %362 = vmatpush.bf16.msrb.mxu0 %v765_v50 }
  0xb1   :  { %431 = vmatpush.bf16.msrb.mxu2 %v1002_v38 }
  0xb5   :  { %432 = vmatpush.bf16.msrb.mxu2 %v1005_v39 }
  0xb9   :  { %433 = vmatpush.bf16.msrb.mxu2 %v1009_v40 }
  0xbd   :  { %434 = vmatpush.bf16.msrb.mxu2 %v1013_v41 }
  0xc1   :  { %435 = vmatpush.bf16.msrb.mxu2 %v768_v47 }
  0xc5   :  { %436 = vmatpush.bf16.msrb.mxu2 %v767_v48 }
  0xc9   :  { %437 = vmatpush.bf16.msrb.mxu2 %v766_v49 }
  0xcd   :  { %438 = vmatpush.bf16.msrb.mxu2 %v765_v50 }
 0x10f   :  { %v173_v42 = vpop.f32.mrf.mxu0 }
 0x110   :  { %v178_v44 = vmul.f32 %v173_v42, %v989_v21  ;;  %v779_v42 = vld [vmem:[#allocation9 + $0x30] sm:$0xff] }
 0x117   :  { %v175_v43 = vpop.f32.mrf.mxu0 }
 0x118   :  { %v179_v45 = vmul.f32 %v175_v43, %v994_v25  ;;  %v778_v43 = vld [vmem:[#allocation9 + $0x28] sm:$0xff] }
 0x11a   :  { %v180_v46 = vpack.c.bf16 %v179_v45, %v178_v44  ;;  %v777_v44 = vld [vmem:[#allocation9 + $0x20] sm:$0xff] }
 0x11c   :  { %240 = vmatmul.bf16.vlgmr.msra.gmra.mxu1 %v180_v46 }
 0x199   :  { %v241_v51 = vpop.f32.mrf.mxu1 }
 0x19a   :  { %v242_v53 = vadd.f32 %v241_v51, %v182_v52  ;;  %v775_v51 = vld [vmem:[#allocation9 + $0x10] sm:$0xff] }
 0x19c   :  { %v246_v56 = vmax.f32 %v242_v53, 0.0  ;;  %v773_v53 = vld [vmem:[#allocation9] sm:$0xff] }
 0x1a1   :  { %v243_v54 = vpop.f32.mrf.mxu1 }
 0x1a2   :  { %v244_v55 = vadd.f32 %v243_v54, %v182_v52  ;;  %v774_v52 = vld [vmem:[#allocation9 + $0x8] sm:$0xff] }
 0x1a4   :  { %v247_v57 = vmax.f32 %v244_v55, 0.0 }
 0x1a6   :  { %v268_v58 = vpack.c.bf16 %v247_v57, %v246_v56 }
 0x1a8   :  { %325 = vmatmul.bf16.vlgmr.msra.gmra.mxu2 %v268_v58 }
 0x22b   :  { %v326_v59 = vpop.f32.mrf.mxu2 }
 0x22c   :  { %v331_v61 = vmul.f32 %v326_v59, %v989_v21 }
 0x233   :  { %v328_v60 = vpop.f32.mrf.mxu2 }
 0x234   :  { %v332_v62 = vmul.f32 %v328_v60, %v994_v25 }
 0x236   :  { %v333_v63 = vpack.c.bf16 %v332_v62, %v331_v61 }
 0x238   :  { %341 = vmatpush.bf16.msra.mxu3 %v333_v63 }
 0x23b   :  { %718 = vmatmul.msk.bf16.vlgmr.msra.gmra.mxu3 %vm160_vm0, %v998_v32 }
 0x2be   :  { %v343_v0 = vpop.f32.mrf.mxu3 }
 0x2bf   :  { %v348_v2 = vmul.f32 %v343_v0, %v989_v21 }
 0x2c1   :  { %v350_v4 = vadd.f32 %v1032_v1, %v348_v2 }
 0x2c3   :  { %v352_v7 = vmax.f32 %v350_v4, 0.0 }
 0x2c6   :  { %v345_v3 = vpop.f32.mrf.mxu3 }
 0x2c7   :  { %v349_v5 = vmul.f32 %v345_v3, %v994_v25 }
 0x2c9   :  { %v351_v6 = vadd.f32 %v1032_v1, %v349_v5 }
 0x2cb   :  { %v353_v8 = vmax.f32 %v351_v6, 0.0 }
 0x2cd   :  { %v354_v9 = vpack.c.bf16 %v353_v8, %v352_v7 }
 0x2cf   :  { %363 = vmatmul.bf16.vlgmr.msrb.gmra.mxu0 %v354_v9 }
 0x34c   :  { %v364_v10 = vpop.f32.mrf.mxu0 }
 0x34d   :  { %v369_v12 = vmul.f32 %v364_v10, %v989_v21 }
 0x354   :  { %v366_v11 = vpop.f32.mrf.mxu0 }
 0x355   :  { %v370_v13 = vmul.f32 %v366_v11, %v994_v25 }
 0x357   :  { %v371_v14 = vpack.c.bf16 %v370_v13, %v369_v12 }
 0x359   :  { %379 = vmatpush.bf16.msrb.mxu3 %v371_v14 }
 0x35c   :  { %719 = vmatmul.msk.bf16.vlgmr.msrb.gmra.mxu3 %vm160_vm0, %v998_v32 }
 0x35d   :  { %393 = vmatpush.bf16.msra.mxu3 %v1002_v38 }
 0x361   :  { %394 = vmatpush.bf16.msra.mxu3 %v1005_v39 }
 0x365   :  { %395 = vmatpush.bf16.msra.mxu3 %v1009_v40 }
 0x369   :  { %396 = vmatpush.bf16.msra.mxu3 %v1013_v41  ;;  %v780_v41 = vld [vmem:[#allocation9 + $0x38] sm:$0xff] }
 0x36a   :  { %533 = vmatpush.bf16.msrb.mxu1 %v780_v41 }
 0x36d   :  { %397 = vmatpush.bf16.msra.mxu3 %v768_v47 }
 0x36e   :  { %534 = vmatpush.bf16.msrb.mxu1 %v779_v42 }
 0x371   :  { %398 = vmatpush.bf16.msra.mxu3 %v767_v48 }
 0x372   :  { %535 = vmatpush.bf16.msrb.mxu1 %v778_v43 }
 0x375   :  { %399 = vmatpush.bf16.msra.mxu3 %v766_v49 }
 0x376   :  { %536 = vmatpush.bf16.msrb.mxu1 %v777_v44 }
 0x379   :  { %400 = vmatpush.bf16.msra.mxu3 %v765_v50  ;;  %v776_v50 = vld [vmem:[#allocation9 + $0x18] sm:$0xff] }
 0x37a   :  { %537 = vmatpush.bf16.msrb.mxu1 %v776_v50 }
 0x37e   :  { %538 = vmatpush.bf16.msrb.mxu1 %v775_v51 }
 0x382   :  { %539 = vmatpush.bf16.msrb.mxu1 %v774_v52 }
 0x386   :  { %540 = vmatpush.bf16.msrb.mxu1 %v773_v53 }
 0x3df   :  { %v381_v15 = vpop.f32.mrf.mxu3 }
 0x3e0   :  { %v386_v16 = vmul.f32 %v381_v15, %v989_v21 }
 0x3e2   :  { %v388_v18 = vadd.f32 %v1032_v1, %v386_v16 }
 0x3e4   :  { %v390_v22 = vmax.f32 %v388_v18, 0.0 }
 0x3e7   :  { %v383_v17 = vpop.f32.mrf.mxu3 }
 0x3e8   :  { %v387_v19 = vmul.f32 %v383_v17, %v994_v25 }
 0x3ea   :  { %v389_v20 = vadd.f32 %v1032_v1, %v387_v19 }
 0x3ec   :  { %v391_v23 = vmax.f32 %v389_v20, 0.0 }
 0x3ee   :  { %v392_v24 = vpack.c.bf16 %v391_v23, %v390_v22 }
 0x3f0   :  { %401 = vmatmul.bf16.vlgmr.msra.gmra.mxu3 %v392_v24 }
 0x473   :  { %v402_v26 = vpop.f32.mrf.mxu3 }
 0x474   :  { %v407_v28 = vmul.f32 %v402_v26, %v989_v21 }
 0x47b   :  { %v404_v27 = vpop.f32.mrf.mxu3 }
 0x47c   :  { %v408_v29 = vmul.f32 %v404_v27, %v994_v25 }
 0x47e   :  { %v409_v30 = vpack.c.bf16 %v408_v29, %v407_v28 }
 0x480   :  { %417 = vmatpush.bf16.msrb.mxu3 %v409_v30 }
 0x483   :  { %720 = vmatmul.msk.bf16.vlgmr.msrb.gmra.mxu3 %vm160_vm0, %v998_v32 }
 0x506   :  { %v419_v31 = vpop.f32.mrf.mxu3 }
 0x507   :  { %v424_v33 = vmul.f32 %v419_v31, %v989_v21 }
 0x509   :  { %v426_v35 = vadd.f32 %v1032_v1, %v424_v33 }
 0x50b   :  { %v428_v38 = vmax.f32 %v426_v35, 0.0 }
 0x50e   :  { %v421_v34 = vpop.f32.mrf.mxu3 }
 0x50f   :  { %v425_v36 = vmul.f32 %v421_v34, %v994_v25 }
 0x511   :  { %v427_v37 = vadd.f32 %v1032_v1, %v425_v36 }
 0x513   :  { %v429_v39 = vmax.f32 %v427_v37, 0.0 }
 0x515   :  { %v430_v40 = vpack.c.bf16 %v429_v39, %v428_v38 }
 0x517   :  { %439 = vmatmul.bf16.vlgmr.msrb.gmra.mxu2 %v430_v40 }
 0x59a   :  { %v440_v45 = vpop.f32.mrf.mxu2 }
 0x59b   :  { %v445_v47 = vmul.f32 %v440_v45, %v989_v21 }
 0x5a2   :  { %v442_v46 = vpop.f32.mrf.mxu2 }
 0x5a3   :  { %v446_v48 = vmul.f32 %v442_v46, %v994_v25 }
 0x5a5   :  { %v447_v49 = vpack.c.bf16 %v446_v48, %v445_v47 }
 0x5a7   :  { %455 = vmatpush.bf16.msra.mxu0 %v447_v49 }
 0x5aa   :  { %721 = vmatmul.msk.bf16.vlgmr.msra.gmra.mxu0 %vm160_vm0, %v998_v32 }
 0x627   :  { %v457_v54 = vpop.f32.mrf.mxu0 }
 0x628   :  { %v462_v55 = vmul.f32 %v457_v54, %v989_v21 }
 0x62a   :  { %v464_v57 = vadd.f32 %v1032_v1, %v462_v55 }
 0x62c   :  { %v466_v60 = vmax.f32 %v464_v57, 0.0 }
 0x62f   :  { %v459_v56 = vpop.f32.mrf.mxu0 }
 0x630   :  { %v463_v58 = vmul.f32 %v459_v56, %v994_v25 }
 0x632   :  { %v465_v59 = vadd.f32 %v1032_v1, %v463_v58  ;;  %v796_v1 = vld [vmem:[%s1086_s8] ss:$0 sm:$0xff]  ;;  %s913_s8 = smov [#allocation10]  }
 0x633   :  { %s623_s11 = sshll.u32 %s913_s8, 4  ;;  %s624_s11 = int_to_ptr.vmem [resolvable:$true] %s623_s11 }
 0x634   :  { %v467_v61 = vmax.f32 %v465_v59, 0.0 }
 0x636   :  { %v468_v62 = vpack.c.bf16 %v467_v61, %v466_v60 }
 0x638   :  { %541 = vmatmul.bf16.vlgmr.msrb.gmra.mxu1 %v468_v62 }
 0x6b5   :  { %v542_v63 = vpop.f32.mrf.mxu1 }
 0x6b6   :  { %v547_v2 = vmul.f32 %v542_v63, %v989_v21 }
 0x6bd   :  { %v544_v0 = vpop.f32.mrf.mxu1 }
 0x6be   :  { %v548_v3 = vmul.f32 %v544_v0, %v994_v25 }
 0x6c0   :  { %v549_v4 = vpack.c.bf16 %v548_v3, %v547_v2 }
 0x6c2   :  { %557 = vmatpush.bf16.msrb.mxu0 %v549_v4 }
 0x6c5   :  { %754 = vmatmul.msk.bf16.vlgmr.msrb.gmra.mxu0 %vm160_vm0, %v998_v32 }
 0x742   :  { %v559_v5 = vpop.f32.mrf.mxu0 }
 0x743   :  { %v564_v6 = vmul.f32 %v559_v5, %v989_v21 }
 0x745   :  { %v570_v9 = vadd.f32 %v796_v1, %v564_v6 }
 0x74a   :  { %v561_v7 = vpop.f32.mrf.mxu0 }
 0x74b   :  { %v565_v8 = vmul.f32 %v561_v7, %v994_v25 }
 0x74d   :  { %v571_v10 = vadd.f32 %v796_v1, %v565_v8 }
 0x74f   :  { %v579_v11 = vmax.f32 %v570_v9, %v571_v10 }
 0x751   :  { %v580_v12 = vrot.slane %v579_v11, 4 }
 0x753   :  { %v581_v13 = vmax.f32 %v579_v11, %v580_v12 }
 0x755   :  { %v582_v14 = vrot.slane %v581_v13, 2 }
 0x757   :  { %v583_v15 = vmax.f32 %v581_v13, %v582_v14 }
 0x759   :  { %v584_v16 = vrot.slane %v583_v15, 1 }
 0x75b   :  { %v585_v17 = vmax.f32 %v583_v15, %v584_v16 }
 0x75d   :  { %v586_v32 = vsub.f32 %v570_v9, %v585_v17  ;;  %v587_v18 = vsub.f32 %v571_v10, %v585_v17 }
 0x75f   :  { %v588_v19 = vmul.f32 1.442695, %v586_v32  ;;  %v590_v21 = vmul.f32 1.442695, %v587_v18 }
 0x761   :  { %797 = vpow2.f32 %v588_v19 }
 0x762   :  { %799 = vpow2.f32 %v590_v21 }
 0x767   :  { %v798_v20 = vpop.eup %797 }
 0x768   :  { %v800_v22 = vpop.eup %799 }
 0x769   :  { %v594_v23 = vadd.f32 %v800_v22, %v798_v20 }
 0x76b   :  { %v595_v24 = vrot.slane %v594_v23, 4 }
 0x76d   :  { %v596_v25 = vadd.f32 %v595_v24, %v594_v23 }
 0x76f   :  { %v597_v26 = vrot.slane %v596_v25, 2 }
 0x771   :  { %v598_v27 = vadd.f32 %v597_v26, %v596_v25 }
 0x773   :  { %v599_v28 = vrot.slane %v598_v27, 1 }
 0x775   :  { %v600_v29 = vadd.f32 %v599_v28, %v598_v27 }
 0x777   :  { %801 = vrcp.f32 %v600_v29  ;;  %v612_v34 = vand.u32 2147483648, %v600_v29  ;;  %v610_v36 = vand.u32 2147483647, %v600_v29  ;;  %vm606_vm2 = vweird.f32 %v600_v29 }
 0x779   :  { %v613_v38 = vor.u32 1.1754944e-38, %v612_v34  ;;  %vm611_vm4 = vcmp.eq.f32.partialorder %v610_v36, 8.507059e+37 }
 0x77d   :  { %v802_v30 = vpop.eup %801 }
 0x77e   :  { %v602_v31 = vmul.f32 %v802_v30, %v600_v29  ;;  %vm607_vm1 = vweird.f32 %v802_v30 }
 0x77f   :  { %vm608_vm3 = vmor %vm606_vm2, %vm607_vm1 }
 0x780   :  { %v603_v33 = vsub.f32 1.0, %v602_v31 }
 0x782   :  { %v604_v35 = vmul.f32 %v802_v30, %v603_v33 }
 0x784   :  { %v605_v37 = vadd.f32 %v802_v30, %v604_v35 }
 0x786   :  { %v609_v39 = vsel %vm608_vm3, %v802_v30, %v605_v37 }
 0x787   :  { %v614_v40 = vsel %vm611_vm4, %v613_v38, %v609_v39 }
 0x788   :  { %v616_v41 = vmul.f32 %v800_v22, %v614_v40  ;;  %v615_v42 = vmul.f32 %v798_v20, %v614_v40 }
 0x78a   :  { %618 = vst [vmem:[#allocation10 + $0x8] sm:$0xff] %v616_v41 }
 0x78b   :  { %617 = vst [vmem:[#allocation10] sm:$0xff] %v615_v42 }
 0x78c   :  { %631 = dma.vmem_to_hbm [thread:$0]  %s624_s11, 256, %s626_s14, [#allocation6], %s914_s15, %s914_s15, %s915_s16  }
 0x78d   :  { %905 = dma.done.wait [#allocation6], 256  }
 0x78e   :  { %906 = vsyncadd [#allocation6], 4294967040 }
 0x78f   :  { %636 = vsyncpa [#allocation5], 1 }
 0x790   :  { %637 = vsyncpa [#allocation8], 1 }
 0x791   :  { %638 = vsyncpa [#allocation6], 1 }
 0x792   :  { %639 = vsyncmov [#allocation3] }
 0x795   :  { %s640_s17 = vpop.sfrf %639 }
 0x796   :  { %p755_p0 = scmp.ne.s32.totalorder %s640_s17, 0 }
 0x798   :  { %644 = shalt.err (%p755_p0)  }

</bundles_post_ra>
